<compile_context>
chip_gen: v5e
topology: v5e:2x2
jax: 0.10.0
libtpu: 0.0.40
codegen_flags: <defaults>
</compile_context>

<pallas_src>
import functools
import math

import jax
import jax.numpy as jnp
import numpy as np
from jax.experimental import pallas as pl
from jax.experimental.pallas import tpu as pltpu

LOG5 = math.log(5.0)


def _latent_encoder_kernel(x_ref, w_ref, b_ref, es_ref, mask_ref, out_ref, *,
                           H, W, Cin, Cout):
    """One grid step = one batch element. Channels on sublanes, H*W on lanes.

    x_ref:    (1, Cin, (H+2)*W + 2)  H-padded, spatially flattened input with
                                     one guard zero prepended and appended.
    w_ref:    (Cout, 9*Cin)          conv weights, tap-major / in-channel-minor.
    b_ref:    (Cout, 1)              conv bias.
    es_ref:   (Cout, 1)              exp(3*scale), precomputed in the wrapper.
    mask_ref: (2, H*W)               row 0: left-tap validity (col != 0),
                                     row 1: right-tap validity (col != W-1).
    out_ref:  (1, Cout, H*W)         rows [:C] = mean, rows [C:] = clamped
                                     log_stddev (NCHW order, spatial flattened).
    """
    HW = H * W
    C = Cout // 2

    xf = x_ref[0]                      # (Cin, (H+2)*W + 2)
    lmask = mask_ref[0:1, :]           # (1, HW)
    rmask = mask_ref[1:2, :]           # (1, HW)

    # im2col: each tap (dh, dw) is a static lane-offset view of the flattened,
    # H-padded image; row-wrap artifacts of the horizontal shifts are zeroed
    # by the precomputed edge masks (cheap VPU multiplies).
    taps = []
    for dh in range(3):
        for dw in range(3):
            k = dh * W + dw            # static lane offset (guard zero absorbs dw-1)
            t = xf[:, k:k + HW]        # (Cin, HW)
            if dw == 0:
                t = t * lmask
            elif dw == 2:
                t = t * rmask
            taps.append(t)
    patches = jnp.concatenate(taps, axis=0)            # (9*Cin, HW)

    # Single fused contraction on the MXU: K = 9*Cin, N = HW (lane-dense).
    acc = jnp.dot(w_ref[...], patches,
                  preferred_element_type=jnp.float32)  # (Cout, HW)

    # Conv2dZeros: (conv(x) + bias) * exp(3 * scale)  (exp precomputed).
    y = (acc + b_ref[...]) * es_ref[...]

    # mean = first C channels (untouched); log_stddev = last C, clamped.
    row = jax.lax.broadcasted_iota(jnp.int32, (Cout, HW), 0)
    y_clamped = jnp.clip(y, -10.0, LOG5)
    out_ref[0] = jnp.where(row >= C, y_clamped, y)     # one lane-dense store


@jax.jit
def latent_encoder_forward(x_nchw, weight_oihw, bias, scale):
    """Conv2dZeros head forward (mean, clamped log_stddev), NCHW in / NCHW out.

    Args:
      x_nchw:      (N, Cin, H, W) float32     (PyTorch layout, kept as-is)
      weight_oihw: (Cout, Cin, 3, 3) float32  (PyTorch conv weight layout)
      bias:        (Cout,) float32
      scale:       (Cout,) float32            (the (1, Cout, 1, 1) param, flat)

    Returns:
      (mean, log_stddev), each (N, Cout//2, H, W) float32.
    """
    N, Cin, H, W = x_nchw.shape
    Cout, Cin_w, KH, KW = weight_oihw.shape
    assert KH == 3 and KW == 3, "Conv2dZeros uses a 3x3 kernel"
    assert Cin_w == Cin, "weight in_channels mismatch"
    assert Cout == 2 * Cin, "Conv2dZeros head expects out_channels == 2*in_channels"

    HW = H * W
    FLAT = (H + 2) * W + 2

    # --- parameter preprocessing (hoisted out of the per-step kernel body) ---
    # (Cout, 9*Cin), tap-major / input-channel-minor: w2[o, (dh*3+dw)*Cin + ci]
    w2 = jnp.transpose(weight_oihw.astype(jnp.float32),
                       (0, 2, 3, 1)).reshape(Cout, 9 * Cin)
    b2 = bias.reshape(Cout, 1).astype(jnp.float32)
    es = jnp.exp(scale.reshape(Cout, 1).astype(jnp.float32) * 3.0)

    # --- input layout glue: stay NCHW, pad H only, flatten spatial ---
    x = x_nchw.astype(jnp.float32)
    x = jnp.pad(x, ((0, 0), (0, 0), (1, 1), (0, 0)))     # H padding (top/bottom)
    x = x.reshape(N, Cin, (H + 2) * W)                   # flatten spatial (free)
    x = jnp.pad(x, ((0, 0), (0, 0), (1, 1)))             # guard zeros for shifts

    # Column-edge validity masks for the horizontal taps (constants).
    col = np.arange(HW) % W
    edge_mask = jnp.asarray(
        np.stack([(col != 0), (col != W - 1)], axis=0).astype(np.float32))

    kernel = functools.partial(_latent_encoder_kernel,
                               H=H, W=W, Cin=Cin, Cout=Cout)

    flops = 2 * N * HW * 9 * Cin * Cout
    bytes_accessed = 4 * (N * Cin * FLAT + Cout * 9 * Cin + 2 * Cout
                          + 2 * HW + N * Cout * HW)

    out = pl.pallas_call(
        kernel,
        out_shape=jax.ShapeDtypeStruct((N, Cout, HW), jnp.float32),
        grid=(N,),
        in_specs=[
            pl.BlockSpec((1, Cin, FLAT), lambda n: (n, 0, 0)),
            pl.BlockSpec((Cout, 9 * Cin), lambda n: (0, 0)),
            pl.BlockSpec((Cout, 1), lambda n: (0, 0)),
            pl.BlockSpec((Cout, 1), lambda n: (0, 0)),
            pl.BlockSpec((2, HW), lambda n: (0, 0)),
        ],
        out_specs=pl.BlockSpec((1, Cout, HW), lambda n: (n, 0, 0)),
        compiler_params=pltpu.CompilerParams(
            dimension_semantics=("parallel",)),
        cost_estimate=pl.CostEstimate(
            flops=flops, transcendentals=0, bytes_accessed=bytes_accessed),
    )(x, w2, b2, es, edge_mask)

    # Free glue: channel split + reshape back to (N, C, H, W) — already NCHW.
    C = Cout // 2
    mean = out[:, :C, :].reshape(N, C, H, W)
    log_stddev = out[:, C:, :].reshape(N, C, H, W)
    return mean, log_stddev


def _reference_forward(x_nchw, weight_oihw, bias, scale):
    """Plain-JAX reference (mirrors the PyTorch forward) for verification."""
    y = jax.lax.conv_general_dilated(
        x_nchw, weight_oihw, window_strides=(1, 1),
        padding=((1, 1), (1, 1)),
        dimension_numbers=("NCHW", "OIHW", "NCHW"))
    y = y + bias.reshape(1, -1, 1, 1)
    y = y * jnp.exp(scale.reshape(1, -1, 1, 1) * 3.0)
    C = y.shape[1] // 2
    mean = y[:, :C]
    log_stddev = jnp.clip(y[:, C:], -10.0, LOG5)
    return mean, log_stddev


if __name__ == "__main__":
    # Small deterministic example: batch=2, in_channels=4, spatial 16x16.
    N, Cin, H, W = 2, 4, 16, 16
    Cout = 2 * Cin

    key = jax.random.PRNGKey(0)
    kx, kw, kb, ks = jax.random.split(key, 4)

    x = jax.random.normal(kx, (N, Cin, H, W), dtype=jnp.float32)
    # Deterministic (nonzero) parameter init; the module's actual init is zeros.
    weight = 0.1 * jax.random.normal(kw, (Cout, Cin, 3, 3), dtype=jnp.float32)
    bias = 0.1 * jax.random.normal(kb, (Cout,), dtype=jnp.float32)
    scale = 0.1 * jax.random.normal(ks, (Cout,), dtype=jnp.float32)

    mean, log_stddev = latent_encoder_forward(x, weight, bias, scale)
    mean = jax.block_until_ready(mean)
    log_stddev = jax.block_until_ready(log_stddev)

    mean_ref, logstd_ref = _reference_forward(x, weight, bias, scale)
    np.testing.assert_allclose(np.asarray(mean), np.asarray(mean_ref),
                               rtol=1e-5, atol=1e-5)
    np.testing.assert_allclose(np.asarray(log_stddev), np.asarray(logstd_ref),
                               rtol=1e-5, atol=1e-5)

    print("KERNEL_OK")
</pallas_src>

<mosaic_0001>
module attributes {stable_mosaic.version = 11 : i64} {
  func.func @_latent_encoder_kernel(%arg0: i32, %arg1: memref<1x4x290xf32, #tpu.memory_space<vmem>>, %arg2: memref<8x36xf32, #tpu.memory_space<vmem>>, %arg3: memref<8x1xf32, #tpu.memory_space<vmem>>, %arg4: memref<8x1xf32, #tpu.memory_space<vmem>>, %arg5: memref<2x256xf32, #tpu.memory_space<vmem>>, %arg6: memref<1x8x256xf32, #tpu.memory_space<vmem>>) attributes {dimension_semantics = [#tpu.dimension_semantics<parallel>], iteration_bounds = array<i64: 2>, scalar_prefetch = 0 : i64, scratch_operands = 0 : i64, tpu.core_type = #tpu.core_type<tc>, window_params = [{transform_indices = @transform_0, window_bounds = array<i64: 1, 4, 290>}, {pipeline_mode = #tpu.pipeline_mode<synchronous>, transform_indices = @transform_1, window_bounds = array<i64: 8, 36>}, {pipeline_mode = #tpu.pipeline_mode<synchronous>, transform_indices = @transform_2, window_bounds = array<i64: 8, 1>}, {pipeline_mode = #tpu.pipeline_mode<synchronous>, transform_indices = @transform_3, window_bounds = array<i64: 8, 1>}, {pipeline_mode = #tpu.pipeline_mode<synchronous>, transform_indices = @transform_4, window_bounds = array<i64: 2, 256>}, {transform_indices = @transform_5, window_bounds = array<i64: 1, 8, 256>}]} {
    %c0 = arith.constant 0 : index
    %c0_0 = arith.constant 0 : index
    %c0_1 = arith.constant 0 : index
    %0 = vector.load %arg1[%c0, %c0_0, %c0_1] : memref<1x4x290xf32, #tpu.memory_space<vmem>>, vector<1x4x290xf32>
    %1 = vector.shape_cast %0 : vector<1x4x290xf32> to vector<4x290xf32>
    %c0_2 = arith.constant 0 : index
    %c0_3 = arith.constant 0 : index
    %2 = vector.load %arg5[%c0_2, %c0_3] : memref<2x256xf32, #tpu.memory_space<vmem>>, vector<1x256xf32>
    %c1 = arith.constant 1 : index
    %c0_4 = arith.constant 0 : index
    %3 = vector.load %arg5[%c1, %c0_4] : memref<2x256xf32, #tpu.memory_space<vmem>>, vector<1x256xf32>
    %4 = vector.extract_strided_slice %1 {offsets = [0, 0], sizes = [4, 256], strides = [1, 1]} : vector<4x290xf32> to vector<4x256xf32>
    %5 = vector.broadcast %2 : vector<1x256xf32> to vector<4x256xf32>
    %6 = arith.mulf %4, %5 : vector<4x256xf32>
    %7 = vector.extract_strided_slice %1 {offsets = [0, 1], sizes = [4, 256], strides = [1, 1]} : vector<4x290xf32> to vector<4x256xf32>
    %8 = vector.extract_strided_slice %1 {offsets = [0, 2], sizes = [4, 256], strides = [1, 1]} : vector<4x290xf32> to vector<4x256xf32>
    %9 = vector.broadcast %3 : vector<1x256xf32> to vector<4x256xf32>
    %10 = arith.mulf %8, %9 : vector<4x256xf32>
    %11 = vector.extract_strided_slice %1 {offsets = [0, 16], sizes = [4, 256], strides = [1, 1]} : vector<4x290xf32> to vector<4x256xf32>
    %12 = vector.broadcast %2 : vector<1x256xf32> to vector<4x256xf32>
    %13 = arith.mulf %11, %12 : vector<4x256xf32>
    %14 = vector.extract_strided_slice %1 {offsets = [0, 17], sizes = [4, 256], strides = [1, 1]} : vector<4x290xf32> to vector<4x256xf32>
    %15 = vector.extract_strided_slice %1 {offsets = [0, 18], sizes = [4, 256], strides = [1, 1]} : vector<4x290xf32> to vector<4x256xf32>
    %16 = vector.broadcast %3 : vector<1x256xf32> to vector<4x256xf32>
    %17 = arith.mulf %15, %16 : vector<4x256xf32>
    %18 = vector.extract_strided_slice %1 {offsets = [0, 32], sizes = [4, 256], strides = [1, 1]} : vector<4x290xf32> to vector<4x256xf32>
    %19 = vector.broadcast %2 : vector<1x256xf32> to vector<4x256xf32>
    %20 = arith.mulf %18, %19 : vector<4x256xf32>
    %21 = vector.extract_strided_slice %1 {offsets = [0, 33], sizes = [4, 256], strides = [1, 1]} : vector<4x290xf32> to vector<4x256xf32>
    %22 = vector.extract_strided_slice %1 {offsets = [0, 34], sizes = [4, 256], strides = [1, 1]} : vector<4x290xf32> to vector<4x256xf32>
    %23 = vector.broadcast %3 : vector<1x256xf32> to vector<4x256xf32>
    %24 = arith.mulf %22, %23 : vector<4x256xf32>
    %25 = tpu.concatenate %6, %7, %10, %13, %14, %17, %20, %21, %24 in 0 : vector<4x256xf32>, vector<4x256xf32>, vector<4x256xf32>, vector<4x256xf32>, vector<4x256xf32>, vector<4x256xf32>, vector<4x256xf32>, vector<4x256xf32>, vector<4x256xf32> -> vector<36x256xf32>
    %c0_5 = arith.constant 0 : index
    %c0_6 = arith.constant 0 : index
    %26 = vector.load %arg2[%c0_5, %c0_6] : memref<8x36xf32, #tpu.memory_space<vmem>>, vector<8x36xf32>
    %cst = arith.constant dense<0.000000e+00> : vector<8x256xf32>
    %27 = tpu.matmul %26, %25, %cst {dimension_numbers = #tpu.dot_dimension_numbers<[1], [0], [0], [1], [0, 0, 1, 1], [], []>} : vector<8x36xf32>, vector<36x256xf32>, vector<8x256xf32> -> vector<8x256xf32>
    %c0_7 = arith.constant 0 : index
    %c0_8 = arith.constant 0 : index
    %28 = vector.load %arg3[%c0_7, %c0_8] : memref<8x1xf32, #tpu.memory_space<vmem>>, vector<8x1xf32>
    %29 = vector.broadcast %28 : vector<8x1xf32> to vector<8x256xf32>
    %30 = arith.addf %27, %29 : vector<8x256xf32>
    %c0_9 = arith.constant 0 : index
    %c0_10 = arith.constant 0 : index
    %31 = vector.load %arg4[%c0_9, %c0_10] : memref<8x1xf32, #tpu.memory_space<vmem>>, vector<8x1xf32>
    %32 = vector.broadcast %31 : vector<8x1xf32> to vector<8x256xf32>
    %33 = arith.mulf %30, %32 : vector<8x256xf32>
    %34 = tpu.iota {dimensions = array<i32: 0>} : vector<8x256xi32>
    %cst_11 = arith.constant -1.000000e+01 : f32
    %cst_12 = arith.constant 1.60943794 : f32
    %35 = vector.broadcast %cst_11 : f32 to vector<8x256xf32>
    %36 = arith.maximumf %35, %33 : vector<8x256xf32>
    %37 = vector.broadcast %cst_12 : f32 to vector<8x256xf32>
    %38 = arith.minimumf %37, %36 : vector<8x256xf32>
    %c4_i32 = arith.constant 4 : i32
    %39 = vector.broadcast %c4_i32 : i32 to vector<8x256xi32>
    %40 = arith.cmpi sge, %34, %39 : vector<8x256xi32>
    %41 = arith.select %40, %38, %33 : vector<8x256xi1>, vector<8x256xf32>
    %c0_13 = arith.constant 0 : index
    %c0_14 = arith.constant 0 : index
    %c0_15 = arith.constant 0 : index
    %42 = vector.load %arg6[%c0_13, %c0_14, %c0_15] : memref<1x8x256xf32, #tpu.memory_space<vmem>>, vector<1x8x256xf32>
    %43 = vector.shape_cast %42 : vector<1x8x256xf32> to vector<8x256xf32>
    %44 = vector.shape_cast %41 : vector<8x256xf32> to vector<1x8x256xf32>
    tpu.vector_store %arg6[%c0_13, %c0_14, %c0_15], %44 {strides = array<i32>} : memref<1x8x256xf32, #tpu.memory_space<vmem>>, vector<1x8x256xf32>,
    return
  }
  func.func @transform_0(%arg0: i32) -> (i32, i32, i32) {
    %c0_i32 = arith.constant 0 : i32
    %c0_i32_0 = arith.constant 0 : i32
    %c0_i32_1 = arith.constant 0 : i32
    return %arg0, %c0_i32, %c0_i32_0 : i32, i32, i32
  }
  func.func @transform_1(%arg0: i32) -> (i32, i32) {
    %c0_i32 = arith.constant 0 : i32
    %c0_i32_0 = arith.constant 0 : i32
    %c0_i32_1 = arith.constant 0 : i32
    return %c0_i32, %c0_i32_0 : i32, i32
  }
  func.func @transform_2(%arg0: i32) -> (i32, i32) {
    %c0_i32 = arith.constant 0 : i32
    %c0_i32_0 = arith.constant 0 : i32
    %c0_i32_1 = arith.constant 0 : i32
    return %c0_i32, %c0_i32_0 : i32, i32
  }
  func.func @transform_3(%arg0: i32) -> (i32, i32) {
    %c0_i32 = arith.constant 0 : i32
    %c0_i32_0 = arith.constant 0 : i32
    %c0_i32_1 = arith.constant 0 : i32
    return %c0_i32, %c0_i32_0 : i32, i32
  }
  func.func @transform_4(%arg0: i32) -> (i32, i32) {
    %c0_i32 = arith.constant 0 : i32
    %c0_i32_0 = arith.constant 0 : i32
    %c0_i32_1 = arith.constant 0 : i32
    return %c0_i32, %c0_i32_0 : i32, i32
  }
  func.func @transform_5(%arg0: i32) -> (i32, i32, i32) {
    %c0_i32 = arith.constant 0 : i32
    %c0_i32_0 = arith.constant 0 : i32
    %c0_i32_1 = arith.constant 0 : i32
    return %arg0, %c0_i32, %c0_i32_0 : i32, i32, i32
  }
}

</mosaic_0001>

<bundles_post_ra>
// kernel: latent_encoder_forward.1
= control target key start
LH: loop header
LB: loop body
LE: loop exit
PB: predicated region body
PF: predicated region fallthrough
CT: control target
= control target key end

     0   :  { %s710_s18 = smov 0   ;;  %s830_s0 = inlined_call_operand.vmem [shape: f32[2,4,290], index: 0, kind: input, shape index: {}]   ;;  %s831_s1 = inlined_call_operand.vmem [shape: f32[8,36], index: 1, kind: input, shape index: {}]   ;;  %s832_s2 = inlined_call_operand.vmem [shape: f32[8,1], index: 2, kind: input, shape index: {}]   ;;  %s833_s3 = inlined_call_operand.vmem [shape: f32[8,1], index: 3, kind: input, shape index: {}]   ;;  %s834_s4 = inlined_call_operand.vmem [shape: f32[2,256], index: 4, kind: input, shape index: {}]   ;;  %s835_s5 = inlined_call_operand.vmem [shape: f32[2,8,256], index: 5, kind: output, shape index: {}]  }
   0x1 LB: > { %s581_s19 = sadd.s32 4294967295, %s664_s18   ;;  %p585_p0 = scmp.ge.s32.totalorder %s664_s18, 1  ;;  %s664_s18 = sphi %s710_s18, %s15_s18  }
   0x2   : > { %p187_p1 = scmp.lt.s32.totalorder %s664_s18, 3 }
   0x4   : > { %p188_p2 = pnand %p585_p0, %p187_p1 }
   0x5   : > { %p215_p3 = scmp.lt.s32.totalorder (!%p188_p2), %s581_s19, 1  ;;  %s666_s25 = smov (!%p188_p2), 2  }
   0x6   : > { %191 = sbr.rel (%p188_p2) target bundleno = 460 (0x1cc), region = 40  ;;  %s667_s26 = smov (!%p188_p2), 18  }
   0x7   : > { %s668_s30 = smov (!%p188_p2), 34   ;;  %s669_s6 = smov (!%p188_p2), 16  }
   0x8   : > { %s670_s7 = smov (!%p188_p2), 32   ;;  %s671_s8 = smov (!%p188_p2), 126  }
   0x9   : > { %s672_s9 = smov (!%p188_p2), 112   ;;  %s673_s10 = smov (!%p188_p2), 111  }
   0xa   : > { %s674_s11 = smov (!%p188_p2), 110   ;;  %s675_s12 = smov (!%p188_p2), 96  }
   0xb   : > { %v589_v0 = vld [vmem:[%s834_s4 + $0x1] ss:$2 sm:$0x3]  ;;  %v227_v3 = vld [vmem:[%s834_s4] ss:$2 sm:$0x3] }
   0xc   : > { %v239_v1 = vperm.slane %v589_v0, 0  ;;  %v240_v2 = vperm.slane %v589_v0, 1  ;;  %vm234_vm0 = vcmask 1043456   ;;  %v232_v4 = vperm.slane %v227_v3, 1  ;;  %s837_s19 = smov (!%p215_p3, %s581_s19), 1  ;;  %s676_s13 = smov 95  }
   0xd   : > { %v231_v6 = vperm.slane %v227_v3, 0  ;;  %s597_s24 = smul.u32 12, %s837_s19  ;;  %vm246_vm1 = vcmask 15360   ;;  %vm255_vm2 = vcmask 130048   ;;  %vm264_vm3 = vcmask 146432   ;;  %s677_s14 = smov 94  }
   0xe   : > { %v241_v5 = vrot.slane %v240_v2, 4  ;;  %v233_v7 = vrot.slane %v232_v4, 4  ;;  %vm273_vm4 = vcmask 261120   ;;  %vm282_vm5 = vcmask 277504   ;;  %s678_s15 = smov 127  }
   0xf   : > { %s219_s29 = scalar_lea.vmem %s830_s0, %s597_s24  ;;  %vm385_vm6 = vcmask 900096   ;;  %vm404_vm7 = vcmask 785408   ;;  %vm422_vm8 = vcmask 777216   ;;  %vm365_vm9 = vcmask 908288   ;;  %s596_s24 = sshll.u32 %s837_s19, 4 }
  0x10   : > { %v242_v8 = vsel %vm234_vm0, %v239_v1, %v241_v5  ;;  %v235_v9 = vsel %vm234_vm0, %v231_v6, %v233_v7  ;;  %v732_v10 = vld [vmem:[%s219_s29] sm:$0xff]  ;;  %v740_v14 = vld [vmem:[%s219_s29 + $0x8] sm:$0xf]  ;;  %vm441_vm10 = vcmask 769024   ;;  %vm348_vm11 = vcmask 916480   ;;  %s224_s27 = scalar_lea.vmem %s835_s5, %s596_s24 }
  0x11   : > { %243 = vrot.lane.b32.xlu0 %v242_v8, %s666_s25  ;;  %261 = vrot.lane.b32.xlu1 %v242_v8, %s667_s26  ;;  %v237_v11 = vmul.f32 %v235_v9, %v732_v10  ;;  %299 = vst [vmem:[#allocation1 + $0x11] ss:$2 sm:$0xff] %v740_v14  ;;  %vm328_vm12 = vcmask 1031168   ;;  %vm309_vm13 = vcmask 1039360   ;;  %vm459_vm14 = vcmask 293888  }
  0x12   : > { %279 = vrot.lane.b32.xlu2 %v242_v8, %s668_s30 }
  0x13   : > { %289 = vst [vmem:[#allocation1] ss:$2 sm:$0xff] %v237_v11 }
  0x18   : > { %v743_v17 = vld.sshfl [vmem:[#allocation1 + $0x10] sm:$0xff pattern:$0x75316420] }
  0x19   : > { %252 = vrot.lane.b32.xlu0 %v235_v9, %s669_s6  ;;  %270 = vrot.lane.b32.xlu1 %v235_v9, %s670_s7 }
  0x1a   : > { %v735_v12 = vld.sshfl [vmem:[#allocation1] sm:$0xff pattern:$0x75316420]  ;;  %v737_v13 = vld.sshfl [vmem:[#allocation1 + $0x8] sm:$0xff pattern:$0x75316420] }
  0x1b   : > { %297 = vst [vmem:[#allocation1 + $0x1] ss:$2 sm:$0xff] %v732_v10 }
  0x22   : > { %v745_v18 = vld.sshfl [vmem:[#allocation1] sm:$0xff pattern:$0x75316420]  ;;  %v747_v19 = vld.sshfl [vmem:[#allocation1 + $0x8] sm:$0xff pattern:$0x75316420] }
  0x23   : > { %v650_v55 = vpack.i.bf16 %v747_v19, %v745_v18  ;;  %v507_v18 = vld [vmem:[%s833_s3] sm:$0xff]  ;;  %v679_v19 = vmov 0  }
  0x24   : > { %655 = vset.pattern.permute.xlu1 %v679_v19  ;;  %656 = vset.pattern.permute.xlu2 %v679_v19 }
  0x25   : > { %657 = vset.pattern.permute.xlu0 %v679_v19 }
  0x6c   : > { %v280_v54 = vpop.permute.xlu2 %279 }
  0x6d   : > { %v281_v56 = vrot.slane %v280_v54, 4 }
  0x6f   : > { %v283_v61 = vsel %vm282_vm5, %v281_v56, %v280_v54  ;;  %v287_v62 = vmul.f32 %v281_v56, %v740_v14 }
  0x70   : > { %v286_v63 = vmul.f32 %v283_v61, %v732_v10  ;;  %v452_v61 = vld [vmem:[%s831_s1] sm:$0xff] }
  0x83   : > { %v244_v15 = vpop.permute.xlu0 %243  ;;  %v262_v32 = vpop.permute.xlu1 %261 }
  0x84   : > { %v245_v16 = vrot.slane %v244_v15, 4  ;;  %v263_v34 = vrot.slane %v262_v32, 4 }
  0x86   : > { %v247_v20 = vsel %vm246_vm1, %v245_v16, %v244_v15  ;;  %v251_v21 = vmul.f32 %v245_v16, %v740_v14  ;;  %v269_v38 = vmul.f32 %v263_v34, %v740_v14  ;;  %v265_v39 = vsel %vm264_vm3, %v263_v34, %v262_v32 }
  0x87   : > { %v250_v22 = vmul.f32 %v247_v20, %v732_v10  ;;  %v268_v42 = vmul.f32 %v265_v39, %v732_v10 }
  0x88   : > { %318 = vst [vmem:[#allocation1 + $0x10] ss:$2 sm:$0xff] %v251_v21 }
  0x89   : > { %316 = vst [vmem:[#allocation1] ss:$2 sm:$0xff] %v250_v22 }
  0x8b   : > { %v253_v23 = vpop.permute.xlu0 %252  ;;  %v271_v40 = vpop.permute.xlu1 %270 }
  0x8c   : > { %v254_v24 = vrot.slane %v253_v23, 4  ;;  %v272_v43 = vrot.slane %v271_v40, 4 }
  0x8e   : > { %v256_v25 = vsel %vm255_vm2, %v254_v24, %v253_v23  ;;  %v260_v26 = vmul.f32 %v254_v24, %v740_v14  ;;  %v278_v47 = vmul.f32 %v272_v43, %v740_v14  ;;  %v274_v48 = vsel %vm273_vm4, %v272_v43, %v271_v40 }
  0x8f   : > { %v259_v27 = vmul.f32 %v256_v25, %v732_v10  ;;  %v321_v28 = vld.sshfl [vmem:[#allocation1 + $0x10] sm:$0xff pattern:$0x75316420]  ;;  %v277_v50 = vmul.f32 %v274_v48, %v732_v10 }
  0x90   : > { %338 = vst [vmem:[#allocation1 + $0x11] ss:$2 sm:$0xff] %v260_v26  ;;  %326 = vrot.lane.b32.xlu2 %v321_v28, %s671_s8  ;;  %v319_v29 = vld.sshfl [vmem:[#allocation1] sm:$0xff pattern:$0x75316420] }
  0x91   : > { %v320_v30 = vld.sshfl [vmem:[#allocation1 + $0x8] sm:$0xff pattern:$0x75316420] }
  0x92   : > { %v620_v31 = vpack.i.bf16 %v320_v30, %v319_v29  ;;  %336 = vst [vmem:[#allocation1 + $0x1] ss:$2 sm:$0xff] %v259_v27 }
  0x94   : > { %621 = vrot.lane.b32.xlu1 %v620_v31, %s671_s8 }
  0x97   : > { %v753_v33 = vld.sshfl [vmem:[#allocation1 + $0x10] sm:$0xff pattern:$0x75316420] }
  0x98   : > { %355 = vst [vmem:[#allocation1 + $0x10] ss:$2 sm:$0xff] %v740_v14 }
  0x99   : > { %v339_v35 = vld.sshfl [vmem:[#allocation1] sm:$0xff pattern:$0x75316420]  ;;  %v340_v36 = vld.sshfl [vmem:[#allocation1 + $0x8] sm:$0xff pattern:$0x75316420] }
  0x9a   : > { %v625_v37 = vpack.i.bf16 %v340_v36, %v339_v35  ;;  %353 = vst [vmem:[#allocation1] ss:$2 sm:$0xff] %v732_v10 }
  0x9c   : > { %626 = vrot.lane.b32.xlu0 %v625_v37, %s672_s9 }
  0x9f   : > { %v358_v41 = vld.sshfl [vmem:[#allocation1 + $0x10] sm:$0xff pattern:$0x75316420] }
  0xa0   : > { %375 = vst [vmem:[#allocation1 + $0x11] ss:$2 sm:$0xff] %v269_v38  ;;  %363 = vrot.lane.b32.xlu1 %v358_v41, %s673_s10 }
  0xa1   : > { %v356_v44 = vld.sshfl [vmem:[#allocation1] sm:$0xff pattern:$0x75316420]  ;;  %v357_v45 = vld.sshfl [vmem:[#allocation1 + $0x8] sm:$0xff pattern:$0x75316420] }
  0xa2   : > { %v630_v46 = vpack.i.bf16 %v357_v45, %v356_v44  ;;  %373 = vst [vmem:[#allocation1 + $0x1] ss:$2 sm:$0xff] %v268_v42 }
  0xa4   : > { %631 = vrot.lane.b32.xlu0 %v630_v46, %s673_s10 }
  0xa7   : > { %v378_v49 = vld.sshfl [vmem:[#allocation1 + $0x10] sm:$0xff pattern:$0x75316420] }
  0xa8   : > { %394 = vst [vmem:[#allocation1 + $0x10] ss:$2 sm:$0xff] %v278_v47 }
  0xa9   : > { %v376_v51 = vld.sshfl [vmem:[#allocation1] sm:$0xff pattern:$0x75316420]  ;;  %v377_v52 = vld.sshfl [vmem:[#allocation1 + $0x8] sm:$0xff pattern:$0x75316420] }
  0xaa   : > { %v635_v53 = vpack.i.bf16 %v377_v52, %v376_v51  ;;  %392 = vst [vmem:[#allocation1] ss:$2 sm:$0xff] %v277_v50 }
  0xac   : > { %383 = vrot.lane.b32.xlu0 %v378_v49, %s674_s11  ;;  %636 = vrot.lane.b32.xlu2 %v635_v53, %s674_s11 }
  0xaf   : > { %v397_v57 = vld.sshfl [vmem:[#allocation1 + $0x10] sm:$0xff pattern:$0x75316420] }
  0xb0   : > { %412 = vst [vmem:[#allocation1 + $0x11] ss:$2 sm:$0xff] %v740_v14 }
  0xb1   : > { %v395_v58 = vld.sshfl [vmem:[#allocation1] sm:$0xff pattern:$0x75316420]  ;;  %v396_v59 = vld.sshfl [vmem:[#allocation1 + $0x8] sm:$0xff pattern:$0x75316420] }
  0xb2   : > { %v640_v60 = vpack.i.bf16 %v396_v59, %v395_v58  ;;  %410 = vst [vmem:[#allocation1 + $0x1] ss:$2 sm:$0xff] %v732_v10 }
  0xb4   : > { %402 = vrot.lane.b32.xlu0 %v397_v57, %s675_s12  ;;  %641 = vrot.lane.b32.xlu2 %v640_v60, %s675_s12 }
  0xb7   : > { %v415_v0 = vld.sshfl [vmem:[#allocation1 + $0x10] sm:$0xff pattern:$0x75316420] }
  0xb8   : > { %431 = vst [vmem:[#allocation1 + $0x10] ss:$2 sm:$0xff] %v287_v62 }
  0xb9   : > { %v413_v1 = vld.sshfl [vmem:[#allocation1] sm:$0xff pattern:$0x75316420]  ;;  %v414_v2 = vld.sshfl [vmem:[#allocation1 + $0x8] sm:$0xff pattern:$0x75316420] }
  0xba   : > { %v645_v3 = vpack.i.bf16 %v414_v2, %v413_v1  ;;  %429 = vst [vmem:[#allocation1] ss:$2 sm:$0xff] %v286_v63 }
  0xbc   : > { %420 = vrot.lane.b32.xlu2 %v415_v0, %s676_s13  ;;  %646 = vrot.lane.b32.xlu1 %v645_v3, %s676_s13 }
  0xbf   : > { %v434_v4 = vld.sshfl [vmem:[#allocation1 + $0x10] sm:$0xff pattern:$0x75316420] }
  0xc1   : > { %v433_v5 = vld.sshfl [vmem:[#allocation1 + $0x8] sm:$0xff pattern:$0x75316420]  ;;  %v432_v6 = vld.sshfl [vmem:[#allocation1] sm:$0xff pattern:$0x75316420] }
  0xc2   : > { %437 = vrot.lane.b32.xlu0 %v433_v5, %s677_s14 }
  0xc4   : > { %439 = vrot.lane.b32.xlu1 %v434_v4, %s677_s14  ;;  %435 = vrot.lane.b32.xlu2 %v432_v6, %s677_s14  ;;  %v515_v4 = vlaneseq }
  0xca   : > { %307 = vrot.lane.b32.xlu0 %v743_v17, %s678_s15  ;;  %v453_v17 = vld [vmem:[%s832_s2] sm:$0xff] }
  0xcc   : > { %346 = vrot.lane.b32.xlu1 %v753_v33, %s672_s9  ;;  %651 = vrot.lane.b32.xlu2 %v650_v55, %s678_s15 }
  0xd4   : > { %456 = vperm.xlu1 %655, %v453_v17   ;;  %510 = vperm.xlu2 %656, %v507_v18  }
  0xea   : > { %v771_v7 = vpop.permute.xlu2 %326 }
 0x106   : > { %v637_v8 = vpop.permute.xlu2 %636  ;;  %v777_v14 = vpop.permute.xlu1 %621 }
 0x107   : > { %v639_v31 = vunpack.i.h.bf16 %v637_v8  ;;  %v638_v32 = vunpack.i.l.bf16 %v637_v8  ;;  %v624_v39 = vunpack.i.h.bf16 %v777_v14  ;;  %v623_v41 = vunpack.i.l.bf16 %v777_v14 }
 0x109   : > { %v386_v48 = vsel %vm385_vm6, %v638_v32, %v639_v31  ;;  %v329_v55 = vsel %vm328_vm12, %v623_v41, %v624_v39  ;;  %v330_v1 = vsel %vm328_vm12, %v624_v39, %v771_v7 }
 0x10e   : > { %v773_v9 = vpop.permute.xlu0 %626  ;;  %v642_v10 = vpop.permute.xlu2 %641 }
 0x10f   : > { %v644_v26 = vunpack.i.h.bf16 %v642_v10  ;;  %v643_v28 = vunpack.i.l.bf16 %v642_v10  ;;  %v629_v33 = vunpack.i.h.bf16 %v773_v9  ;;  %v628_v34 = vunpack.i.l.bf16 %v773_v9 }
 0x110   : > { %v516_v9 = vshrl.u32 %v515_v4, 7 }
 0x111   : > { %v405_v43 = vsel %vm404_vm7, %v643_v28, %v644_v26  ;;  %v349_v49 = vsel %vm348_vm11, %v628_v34, %v629_v33 }
 0x112   : > { %v364_v20 = vpop.permute.xlu1 %363  ;;  %v446_v57 = vsel %vm234_vm0, %v329_v55, %v349_v49  ;;  %vm521_vm15 = vcmp.ge.s32.totalorder %v516_v9, 4 }
 0x116   : > { %v775_v11 = vpop.permute.xlu0 %631  ;;  %v421_v15 = vpop.permute.xlu2 %420 }
 0x117   : > { %v634_v29 = vunpack.i.h.bf16 %v775_v11  ;;  %v633_v30 = vunpack.i.l.bf16 %v775_v11 }
 0x119   : > { %v366_v44 = vsel %vm365_vm9, %v633_v30, %v634_v29  ;;  %v367_v56 = vsel %vm365_vm9, %v634_v29, %v364_v20 }
 0x11a   : > { %v448_v53 = vsel %vm234_vm0, %v366_v44, %v386_v48 }
 0x11e   : > { %v384_v16 = vpop.permute.xlu0 %383  ;;  %v436_v21 = vpop.permute.xlu2 %435 }
 0x11f   : > { %v387_v50 = vsel %vm385_vm6, %v639_v31, %v384_v16 }
 0x120   : > { %v449_v58 = vsel %vm234_vm0, %v367_v56, %v387_v50 }
 0x126   : > { %v403_v22 = vpop.permute.xlu0 %402  ;;  %v652_v27 = vpop.permute.xlu2 %651 }
 0x127   : > { %v654_v37 = vunpack.i.h.bf16 %v652_v27  ;;  %v653_v38 = vunpack.i.l.bf16 %v652_v27  ;;  %v406_v51 = vsel %vm404_vm7, %v644_v26, %v403_v22 }
 0x129   : > { %v310_v52 = vsel %vm309_vm13, %v653_v38, %v654_v37 }
 0x12a   : > { %v444_v59 = vsel %vm234_vm0, %v735_v12, %v310_v52 }
 0x12e   : > { %v647_v23 = vpop.permute.xlu1 %646  ;;  %v511_v6 = vpop.permute.xlu2 %510 }
 0x12f   : > { %v649_v24 = vunpack.i.h.bf16 %v647_v23  ;;  %v648_v25 = vunpack.i.l.bf16 %v647_v23 }
 0x131   : > { %v423_v36 = vsel %vm422_vm8, %v648_v25, %v649_v24  ;;  %v424_v45 = vsel %vm422_vm8, %v649_v24, %v421_v15 }
 0x132   : > { %v450_v46 = vsel %vm234_vm0, %v405_v43, %v423_v36  ;;  %v451_v54 = vsel %vm234_vm0, %v406_v51, %v424_v45 }
 0x134   : > { %v438_v35 = vpop.permute.xlu0 %437 }
 0x135   : > { %v442_v40 = vsel %vm441_vm10, %v436_v21, %v438_v35 }
 0x136   : > { %v440_v42 = vpop.permute.xlu1 %439  ;;  %590 = vmatpush.msk.msra.mxu0 %vm234_vm0, %v442_v40 }
 0x137   : > { %v443_v47 = vsel %vm441_vm10, %v438_v35, %v440_v42 }
 0x138   : > { %479 = vmatpush.msra.mxu0 %v450_v46  ;;  %592 = vmatpush.msk.msra.mxu1 %vm234_vm0, %v443_v47 }
 0x13a   : > { %480 = vmatpush.msra.mxu0 %v448_v53  ;;  %499 = vmatpush.msra.mxu1 %v451_v54 }
 0x13c   : > { %481 = vmatpush.msra.mxu0 %v446_v57  ;;  %500 = vmatpush.msra.mxu1 %v449_v58  ;;  %v308_v60 = vpop.permute.xlu0 %307 }
 0x13d   : > { %v311_v62 = vsel %vm309_vm13, %v654_v37, %v308_v60 }
 0x13e   : > { %v347_v63 = vpop.permute.xlu1 %346  ;;  %482 = vmatpush.msra.mxu0 %v444_v59  ;;  %v445_v2 = vsel %vm234_vm0, %v737_v13, %v311_v62 }
 0x13f   : > { %v350_v0 = vsel %vm348_vm11, %v629_v33, %v347_v63  ;;  %591 = vmatmul.msk.f32.vlgmr.msra.gmra.mxu0 %vm459_vm14, %v452_v61 }
 0x140   : > { %v447_v12 = vsel %vm234_vm0, %v330_v1, %v350_v0 }
 0x141   : > { %501 = vmatpush.msra.mxu1 %v447_v12 }
 0x143   : > { %502 = vmatpush.msra.mxu1 %v445_v2 }
 0x144   : > { %593 = vmatmul.msk.f32.vlgmr.msra.gmra.mxu1 %vm459_vm14, %v452_v61 }
 0x146   : > { %v457_v3 = vpop.permute.xlu1 %456 }
 0x1bc   : > { %v484_v5 = vpop.f32.mrf.mxu0 }
 0x1bd   : > { %v485_v8 = vadd.f32 %v484_v5, %v457_v3 }
 0x1bf   : > { %v513_v10 = vmul.f32 %v511_v6, %v485_v8 }
 0x1c1   : > { %v517_v11 = vmax.f32 %v513_v10, -10.0  ;;  %v504_v14 = vpop.f32.mrf.mxu1 }
 0x1c2   : > { %v505_v7 = vadd.f32 %v504_v14, %v457_v3 }
 0x1c3   : > { %v519_v13 = vmin.f32 %v517_v11, 1.609438 }
 0x1c4   : > { %v514_v15 = vmul.f32 %v511_v6, %v505_v7 }
 0x1c5   : > { %v522_v16 = vsel %vm521_vm15, %v519_v13, %v513_v10 }
 0x1c6   : > { %524 = vst [vmem:[%s224_s27] sm:$0xff] %v522_v16  ;;  %v518_v17 = vmax.f32 %v514_v15, -10.0 }
 0x1c8   : > { %v520_v18 = vmin.f32 %v518_v17, 1.609438 }
 0x1ca   : > { %v523_v19 = vsel %vm521_vm15, %v520_v18, %v514_v15 }
 0x1cb   : > { %525 = vst [vmem:[%s224_s27 + $0x8] sm:$0xff] %v523_v19 }
 0x1cc PF: > { %s15_s18 = sadd.s32 1, %s664_s18  }
 0x1cd   : > { %p12_p4 = scmp.ge.s32.totalorder %s15_s18, 4  }
 0x1cf   :  { %14 = sbr.rel (!%p12_p4) target bundleno = 1 (0x1), region = 83 }

</bundles_post_ra>
